<compile_context>
chip_gen: v7x
topology: tpu7x:2x2x1
jax: 0.10.0
libtpu: 0.0.40
codegen_flags: <defaults>
</compile_context>

<pallas_src>
import math

import jax
import jax.numpy as jnp
from jax.experimental import pallas as pl
from jax.experimental.pallas import tpu as pltpu

LOG_STD_MAX = 2.0
LOG_STD_MIN = -20.0
_HALF_LOG_2PI = 0.5 * math.log(2.0 * math.pi)
_LOG_2 = math.log(2.0)


def _round_up(x, m):
    return ((x + m - 1) // m) * m


def _make_actor_kernel(act_dim, ls_off, head_w, act_limit, deterministic, with_logprob):
    """Kernel body with all static configuration closed over."""

    need_log_std = with_logprob or (not deterministic)

    def kernel(*refs):
        if deterministic:
            (obs_ref, w1_ref, b1_ref, w2_ref, b2_ref,
             wh_ref, bh_ref, out_ref) = refs
            noise_ref = None
        else:
            (obs_ref, w1_ref, b1_ref, w2_ref, b2_ref,
             wh_ref, bh_ref, noise_ref, out_ref) = refs

        # Trunk: Linear -> ReLU -> Linear -> ReLU (bf16 MXU inputs, f32 accum + f32 bias).
        x = obs_ref[...].astype(jnp.bfloat16)
        h = jnp.dot(x, w1_ref[...], preferred_element_type=jnp.float32) + b1_ref[...]
        h = jnp.maximum(h, 0.0).astype(jnp.bfloat16)
        h = jnp.dot(h, w2_ref[...], preferred_element_type=jnp.float32) + b2_ref[...]
        h = jnp.maximum(h, 0.0).astype(jnp.bfloat16)

        # Fused head: lanes [0:act_dim) -> mu, lanes [ls_off:ls_off+act_dim) -> log_std.
        heads = jnp.dot(h, wh_ref[...], preferred_element_type=jnp.float32) + bh_ref[...]
        mu = heads[:, :act_dim]                                   # (tb, act_dim) f32

        if need_log_std:
            # Realign log_std lanes to offset 0 with a cheap XLU lane rotation.
            ls_slab = pltpu.roll(heads, shift=head_w - ls_off, axis=1)
            log_std = jnp.clip(ls_slab[:, :act_dim], LOG_STD_MIN, LOG_STD_MAX)

        if deterministic:
            pi = mu
        else:
            std = jnp.exp(log_std)
            pi = mu + std * noise_ref[...]

        act = act_limit * jnp.tanh(pi)                            # (tb, act_dim)

        # Lane-dense output slab: zero-fill once, then write action / logp sub-ranges.
        out_ref[...] = jnp.zeros_like(out_ref)
        out_ref[:, :act_dim] = act

        if with_logprob:
            # Normal(mu, std).log_prob(pi): z = (pi - mu)/std == noise by construction
            # (== 0 when deterministic), so no divide is needed.
            if deterministic:
                lp = -log_std - _HALF_LOG_2PI
            else:
                z = noise_ref[...]
                lp = -0.5 * z * z - log_std - _HALF_LOG_2PI
            # tanh-squash correction: 2*(log 2 - a - softplus(-2a)), stable softplus.
            t = -2.0 * pi
            softplus = jnp.maximum(t, 0.0) + jnp.log(1.0 + jnp.exp(-jnp.abs(t)))
            corr = 2.0 * (_LOG_2 - pi - softplus)
            logp = jnp.sum(lp - corr, axis=-1, keepdims=True)     # (tb, 1)
            out_ref[:, act_dim:act_dim + 1] = logp

    return kernel


def prepare_actor_params(raw):
    """One-time parameter preparation (hoisted out of the per-call path).

    raw: dict with w1 (obs,h1), b1 (1,h1), w2 (h1,h2), b2 (1,h2),
         wmu (h2,act), bmu (1,act), wls (h2,act), bls (1,act)  (all float32,
         weights already stored as (in, out) so the kernel computes x @ W + b).
    Returns a dict of bf16 weights / f32 biases plus static packing metadata.
    """
    act_dim = raw["wmu"].shape[1]
    h2 = raw["wmu"].shape[0]
    ls_off = _round_up(max(act_dim, 1), 64)          # 64-aligned start lane for log_std
    head_w = _round_up(ls_off + act_dim, 128)        # fused head lane width (128 for act_dim<=64)

    wh = jnp.zeros((h2, head_w), jnp.float32)
    wh = wh.at[:, :act_dim].set(raw["wmu"])
    wh = wh.at[:, ls_off:ls_off + act_dim].set(raw["wls"])
    bh = jnp.zeros((1, head_w), jnp.float32)
    bh = bh.at[:, :act_dim].set(raw["bmu"])
    bh = bh.at[:, ls_off:ls_off + act_dim].set(raw["bls"])

    return dict(
        w1=raw["w1"].astype(jnp.bfloat16), b1=raw["b1"].astype(jnp.float32),
        w2=raw["w2"].astype(jnp.bfloat16), b2=raw["b2"].astype(jnp.float32),
        wh=wh.astype(jnp.bfloat16), bh=bh,
        act_dim=act_dim, ls_off=ls_off, head_w=head_w)


def squashed_gaussian_actor_forward(obs, prep, noise, act_limit,
                                    deterministic=False, with_logprob=True,
                                    block_b=1024):
    """SAC actor forward pass inside one batch-tiled Pallas TPU kernel.

    obs:   (B, obs_dim) float32
    prep:  output of prepare_actor_params (weights prepared once)
    noise: (B, act_dim) standard-normal sample (ignored / may be None when deterministic)
    Returns (pi_action (B, act_dim) f32, logp_pi (B,) f32 or None).
    """
    obs = jnp.asarray(obs, jnp.float32)
    B, obs_dim = obs.shape
    act_dim = prep["act_dim"]
    ls_off = prep["ls_off"]
    head_w = prep["head_w"]
    out_pad = _round_up(act_dim + 1, 128)

    # Batch tile: big tiles to amortize per-grid-step overhead, but >=2 grid steps for
    # large B so both v7x TensorCores get work.  No host-side padding of obs/noise:
    # partial last block is handled by Pallas (masked writeback).
    tb = min(block_b, max(8, _round_up(pl.cdiv(B, 2), 8)))
    if tb >= B:
        tb = B                                        # single exact block, no partial edge
    grid = (pl.cdiv(B, tb),)

    def replicated(arr):
        return pl.BlockSpec(arr.shape, lambda i: (0, 0))

    in_specs = [
        pl.BlockSpec((tb, obs_dim), lambda i: (i, 0)),
        replicated(prep["w1"]), replicated(prep["b1"]),
        replicated(prep["w2"]), replicated(prep["b2"]),
        replicated(prep["wh"]), replicated(prep["bh"]),
    ]
    inputs = [obs, prep["w1"], prep["b1"], prep["w2"], prep["b2"],
              prep["wh"], prep["bh"]]

    if not deterministic:
        noise = jnp.asarray(noise, jnp.float32)
        in_specs.append(pl.BlockSpec((tb, act_dim), lambda i: (i, 0)))
        inputs.append(noise)

    kernel = _make_actor_kernel(act_dim, ls_off, head_w, float(act_limit),
                                deterministic, with_logprob)

    out = pl.pallas_call(
        kernel,
        out_shape=jax.ShapeDtypeStruct((B, out_pad), jnp.float32),
        grid=grid,
        in_specs=in_specs,
        out_specs=pl.BlockSpec((tb, out_pad), lambda i: (i, 0)),
        compiler_params=pltpu.CompilerParams(
            dimension_semantics=("parallel",),
            vmem_limit_bytes=32 * 1024 * 1024),
    )(*inputs)

    pi_action = out[:, :act_dim]
    logp_pi = out[:, act_dim] if with_logprob else None
    return pi_action, logp_pi


def init_params(key, obs_dim, hidden_sizes, act_dim):
    """Deterministic synthetic init (PyTorch-Linear-like uniform fan-in scaling)."""
    sizes = [obs_dim] + list(hidden_sizes)
    keys = jax.random.split(key, 8)

    def lin(kw, kb, fan_in, fan_out):
        bound = 1.0 / math.sqrt(fan_in)
        w = jax.random.uniform(kw, (fan_in, fan_out), jnp.float32, -bound, bound)
        b = jax.random.uniform(kb, (1, fan_out), jnp.float32, -bound, bound)
        return w, b

    w1, b1 = lin(keys[0], keys[1], sizes[0], sizes[1])
    w2, b2 = lin(keys[2], keys[3], sizes[1], sizes[2])
    wmu, bmu = lin(keys[4], keys[5], sizes[2], act_dim)
    wls, bls = lin(keys[6], keys[7], sizes[2], act_dim)
    return dict(w1=w1, b1=b1, w2=w2, b2=b2, wmu=wmu, bmu=bmu, wls=wls, bls=bls)


def reference_forward(obs, params, noise, act_limit, deterministic=False, with_logprob=True):
    """Pure-JAX f32 reference identical to the PyTorch forward."""
    h = jnp.maximum(obs @ params["w1"] + params["b1"], 0.0)
    h = jnp.maximum(h @ params["w2"] + params["b2"], 0.0)
    mu = h @ params["wmu"] + params["bmu"]
    log_std = jnp.clip(h @ params["wls"] + params["bls"], LOG_STD_MIN, LOG_STD_MAX)
    std = jnp.exp(log_std)
    pi = mu if deterministic else mu + std * noise
    if with_logprob:
        logp = jnp.sum(-0.5 * ((pi - mu) / std) ** 2 - log_std - _HALF_LOG_2PI, axis=-1)
        logp = logp - jnp.sum(2.0 * (_LOG_2 - pi - jax.nn.softplus(-2.0 * pi)), axis=-1)
    else:
        logp = None
    return act_limit * jnp.tanh(pi), logp


if __name__ == "__main__":
    obs_dim = 16
    hidden_sizes = (32, 32)
    act_dim = 8
    act_limit = 1.0

    root = jax.random.PRNGKey(0)
    k_params, k_obs, k_noise, k_obs2, k_noise2 = jax.random.split(root, 5)

    raw_params = init_params(k_params, obs_dim, hidden_sizes, act_dim)
    prep = prepare_actor_params(raw_params)        # hoisted one-time weight packing / bf16 cast

    # bf16 matmul inputs -> looser tolerances vs the f32 reference.
    PI_ATOL, PI_RTOL = 3e-2, 3e-2
    LP_ATOL, LP_RTOL = 3e-1, 3e-2

    # --- Test 1: small batch (single exact block), stochastic + log-prob path. ---
    B = 2
    obs = jax.random.normal(k_obs, (B, obs_dim), jnp.float32)
    noise = jax.random.normal(k_noise, (B, act_dim), jnp.float32)

    pi_action, logp_pi = squashed_gaussian_actor_forward(
        obs, prep, noise, act_limit, deterministic=False, with_logprob=True)
    jax.block_until_ready(pi_action)
    jax.block_until_ready(logp_pi)
    assert pi_action.shape == (B, act_dim)
    assert logp_pi.shape == (B,)

    ref_pi, ref_logp = reference_forward(obs, raw_params, noise, act_limit,
                                         deterministic=False, with_logprob=True)
    assert jnp.allclose(pi_action, ref_pi, atol=PI_ATOL, rtol=PI_RTOL)
    assert jnp.allclose(logp_pi, ref_logp, atol=LP_ATOL, rtol=LP_RTOL)

    # --- Test 2: deterministic / no-logprob path (noise input and logp compute dropped). ---
    pi_det, logp_det = squashed_gaussian_actor_forward(
        obs, prep, None, act_limit, deterministic=True, with_logprob=False)
    jax.block_until_ready(pi_det)
    ref_pi_det, _ = reference_forward(obs, raw_params, None, act_limit,
                                      deterministic=True, with_logprob=False)
    assert logp_det is None and pi_det.shape == (B, act_dim)
    assert jnp.allclose(pi_det, ref_pi_det, atol=PI_ATOL, rtol=PI_RTOL)

    # --- Test 3: batch that exercises the partial (masked) last block, no host padding. ---
    B2 = 20
    obs2 = jax.random.normal(k_obs2, (B2, obs_dim), jnp.float32)
    noise2 = jax.random.normal(k_noise2, (B2, act_dim), jnp.float32)
    pi2, logp2 = squashed_gaussian_actor_forward(
        obs2, prep, noise2, act_limit, deterministic=False, with_logprob=True)
    jax.block_until_ready(pi2)
    ref_pi2, ref_logp2 = reference_forward(obs2, raw_params, noise2, act_limit,
                                           deterministic=False, with_logprob=True)
    assert pi2.shape == (B2, act_dim) and logp2.shape == (B2,)
    assert jnp.allclose(pi2, ref_pi2, atol=PI_ATOL, rtol=PI_RTOL)
    assert jnp.allclose(logp2, ref_logp2, atol=LP_ATOL, rtol=LP_RTOL)

    print("KERNEL_OK")
</pallas_src>

<mosaic_0001>
module attributes {stable_mosaic.version = 11 : i64} {
  func.func @kernel(%arg0: i32, %arg1: memref<2x16xf32, #tpu.memory_space<vmem>>, %arg2: memref<16x32xbf16, #tpu.memory_space<vmem>>, %arg3: memref<1x32xf32, #tpu.memory_space<vmem>>, %arg4: memref<32x32xbf16, #tpu.memory_space<vmem>>, %arg5: memref<1x32xf32, #tpu.memory_space<vmem>>, %arg6: memref<32x128xbf16, #tpu.memory_space<vmem>>, %arg7: memref<1x128xf32, #tpu.memory_space<vmem>>, %arg8: memref<2x8xf32, #tpu.memory_space<vmem>>, %arg9: memref<2x128xf32, #tpu.memory_space<vmem>>) attributes {dimension_semantics = [#tpu.dimension_semantics<parallel>], iteration_bounds = array<i64: 1>, scalar_prefetch = 0 : i64, scratch_operands = 0 : i64, tpu.core_type = #tpu.core_type<tc>, window_params = [{transform_indices = @transform_0, window_bounds = array<i64: 2, 16>}, {pipeline_mode = #tpu.pipeline_mode<synchronous>, transform_indices = @transform_1, window_bounds = array<i64: 16, 32>}, {pipeline_mode = #tpu.pipeline_mode<synchronous>, transform_indices = @transform_2, window_bounds = array<i64: 1, 32>}, {pipeline_mode = #tpu.pipeline_mode<synchronous>, transform_indices = @transform_3, window_bounds = array<i64: 32, 32>}, {pipeline_mode = #tpu.pipeline_mode<synchronous>, transform_indices = @transform_4, window_bounds = array<i64: 1, 32>}, {pipeline_mode = #tpu.pipeline_mode<synchronous>, transform_indices = @transform_5, window_bounds = array<i64: 32, 128>}, {pipeline_mode = #tpu.pipeline_mode<synchronous>, transform_indices = @transform_6, window_bounds = array<i64: 1, 128>}, {transform_indices = @transform_7, window_bounds = array<i64: 2, 8>}, {transform_indices = @transform_8, window_bounds = array<i64: 2, 128>}]} {
    %c0 = arith.constant 0 : index
    %c0_0 = arith.constant 0 : index
    %0 = vector.load %arg1[%c0, %c0_0] : memref<2x16xf32, #tpu.memory_space<vmem>>, vector<2x16xf32>
    %1 = arith.truncf %0 : vector<2x16xf32> to vector<2x16xbf16>
    %c0_1 = arith.constant 0 : index
    %c0_2 = arith.constant 0 : index
    %2 = vector.load %arg2[%c0_1, %c0_2] : memref<16x32xbf16, #tpu.memory_space<vmem>>, vector<16x32xbf16>
    %cst = arith.constant dense<0.000000e+00> : vector<2x32xf32>
    %3 = tpu.matmul %1, %2, %cst {dimension_numbers = #tpu.dot_dimension_numbers<[1], [0], [0], [1], [0, 0, 1, 1], [], []>} : vector<2x16xbf16>, vector<16x32xbf16>, vector<2x32xf32> -> vector<2x32xf32>
    %c0_3 = arith.constant 0 : index
    %c0_4 = arith.constant 0 : index
    %4 = vector.load %arg3[%c0_3, %c0_4] : memref<1x32xf32, #tpu.memory_space<vmem>>, vector<1x32xf32>
    %5 = vector.broadcast %4 : vector<1x32xf32> to vector<2x32xf32>
    %6 = arith.addf %3, %5 : vector<2x32xf32>
    %cst_5 = arith.constant 0.000000e+00 : f32
    %7 = vector.broadcast %cst_5 : f32 to vector<2x32xf32>
    %8 = arith.maximumf %6, %7 : vector<2x32xf32>
    %9 = arith.truncf %8 : vector<2x32xf32> to vector<2x32xbf16>
    %c0_6 = arith.constant 0 : index
    %c0_7 = arith.constant 0 : index
    %10 = vector.load %arg4[%c0_6, %c0_7] : memref<32x32xbf16, #tpu.memory_space<vmem>>, vector<32x32xbf16>
    %cst_8 = arith.constant dense<0.000000e+00> : vector<2x32xf32>
    %11 = tpu.matmul %9, %10, %cst_8 {dimension_numbers = #tpu.dot_dimension_numbers<[1], [0], [0], [1], [0, 0, 1, 1], [], []>} : vector<2x32xbf16>, vector<32x32xbf16>, vector<2x32xf32> -> vector<2x32xf32>
    %c0_9 = arith.constant 0 : index
    %c0_10 = arith.constant 0 : index
    %12 = vector.load %arg5[%c0_9, %c0_10] : memref<1x32xf32, #tpu.memory_space<vmem>>, vector<1x32xf32>
    %13 = vector.broadcast %12 : vector<1x32xf32> to vector<2x32xf32>
    %14 = arith.addf %11, %13 : vector<2x32xf32>
    %cst_11 = arith.constant 0.000000e+00 : f32
    %15 = vector.broadcast %cst_11 : f32 to vector<2x32xf32>
    %16 = arith.maximumf %14, %15 : vector<2x32xf32>
    %17 = arith.truncf %16 : vector<2x32xf32> to vector<2x32xbf16>
    %c0_12 = arith.constant 0 : index
    %c0_13 = arith.constant 0 : index
    %18 = vector.load %arg6[%c0_12, %c0_13] : memref<32x128xbf16, #tpu.memory_space<vmem>>, vector<32x128xbf16>
    %cst_14 = arith.constant dense<0.000000e+00> : vector<2x128xf32>
    %19 = tpu.matmul %17, %18, %cst_14 {dimension_numbers = #tpu.dot_dimension_numbers<[1], [0], [0], [1], [0, 0, 1, 1], [], []>} : vector<2x32xbf16>, vector<32x128xbf16>, vector<2x128xf32> -> vector<2x128xf32>
    %c0_15 = arith.constant 0 : index
    %c0_16 = arith.constant 0 : index
    %20 = vector.load %arg7[%c0_15, %c0_16] : memref<1x128xf32, #tpu.memory_space<vmem>>, vector<1x128xf32>
    %21 = vector.broadcast %20 : vector<1x128xf32> to vector<2x128xf32>
    %22 = arith.addf %19, %21 : vector<2x128xf32>
    %23 = vector.extract_strided_slice %22 {offsets = [0, 0], sizes = [2, 8], strides = [1, 1]} : vector<2x128xf32> to vector<2x8xf32>
    %c64_i32 = arith.constant 64 : i32
    %24 = tpu.dynamic_rotate %22 by %c64_i32 dim 1 : vector<2x128xf32>, i32 -> vector<2x128xf32>
    %25 = vector.extract_strided_slice %24 {offsets = [0, 0], sizes = [2, 8], strides = [1, 1]} : vector<2x128xf32> to vector<2x8xf32>
    %cst_17 = arith.constant -2.000000e+01 : f32
    %cst_18 = arith.constant 2.000000e+00 : f32
    %26 = vector.broadcast %cst_17 : f32 to vector<2x8xf32>
    %27 = arith.maximumf %26, %25 : vector<2x8xf32>
    %28 = vector.broadcast %cst_18 : f32 to vector<2x8xf32>
    %29 = arith.minimumf %28, %27 : vector<2x8xf32>
    %30 = math.exp %29 : vector<2x8xf32>
    %c0_19 = arith.constant 0 : index
    %c0_20 = arith.constant 0 : index
    %31 = vector.load %arg8[%c0_19, %c0_20] : memref<2x8xf32, #tpu.memory_space<vmem>>, vector<2x8xf32>
    %32 = arith.mulf %30, %31 : vector<2x8xf32>
    %33 = arith.addf %23, %32 : vector<2x8xf32>
    %34 = math.tanh %33 : vector<2x8xf32>
    %cst_21 = arith.constant 1.000000e+00 : f32
    %35 = vector.broadcast %cst_21 : f32 to vector<2x8xf32>
    %36 = arith.mulf %35, %34 : vector<2x8xf32>
    %cst_22 = arith.constant 0.000000e+00 : f32
    %37 = vector.broadcast %cst_22 : f32 to vector<2x128xf32>
    %c0_23 = arith.constant 0 : index
    %c0_24 = arith.constant 0 : index
    %38 = vector.load %arg9[%c0_23, %c0_24] : memref<2x128xf32, #tpu.memory_space<vmem>>, vector<2x128xf32>
    tpu.vector_store %arg9[%c0_23, %c0_24], %37 {strides = array<i32>} : memref<2x128xf32, #tpu.memory_space<vmem>>, vector<2x128xf32>,
    %c0_25 = arith.constant 0 : index
    %c0_26 = arith.constant 0 : index
    %39 = vector.load %arg9[%c0_25, %c0_26] : memref<2x128xf32, #tpu.memory_space<vmem>>, vector<2x8xf32>
    tpu.vector_store %arg9[%c0_25, %c0_26], %36 {strides = array<i32>} : memref<2x128xf32, #tpu.memory_space<vmem>>, vector<2x8xf32>,
    %c0_27 = arith.constant 0 : index
    %c0_28 = arith.constant 0 : index
    %40 = vector.load %arg8[%c0_27, %c0_28] : memref<2x8xf32, #tpu.memory_space<vmem>>, vector<2x8xf32>
    %cst_29 = arith.constant -5.000000e-01 : f32
    %41 = vector.broadcast %cst_29 : f32 to vector<2x8xf32>
    %42 = arith.mulf %41, %40 : vector<2x8xf32>
    %43 = arith.mulf %42, %40 : vector<2x8xf32>
    %44 = arith.subf %43, %29 : vector<2x8xf32>
    %cst_30 = arith.constant 0.918938517 : f32
    %45 = vector.broadcast %cst_30 : f32 to vector<2x8xf32>
    %46 = arith.subf %44, %45 : vector<2x8xf32>
    %cst_31 = arith.constant -2.000000e+00 : f32
    %47 = vector.broadcast %cst_31 : f32 to vector<2x8xf32>
    %48 = arith.mulf %47, %33 : vector<2x8xf32>
    %cst_32 = arith.constant 0.000000e+00 : f32
    %49 = vector.broadcast %cst_32 : f32 to vector<2x8xf32>
    %50 = arith.maximumf %48, %49 : vector<2x8xf32>
    %51 = math.absf %48 : vector<2x8xf32>
    %cst_33 = arith.constant 0.000000e+00 : f32
    %52 = vector.broadcast %cst_33 : f32 to vector<2x8xf32>
    %53 = arith.subf %52, %51 : vector<2x8xf32>
    %54 = math.exp %53 : vector<2x8xf32>
    %cst_34 = arith.constant 1.000000e+00 : f32
    %55 = vector.broadcast %cst_34 : f32 to vector<2x8xf32>
    %56 = arith.addf %55, %54 : vector<2x8xf32>
    %57 = math.log %56 : vector<2x8xf32>
    %58 = arith.addf %50, %57 : vector<2x8xf32>
    %cst_35 = arith.constant 0.693147182 : f32
    %59 = vector.broadcast %cst_35 : f32 to vector<2x8xf32>
    %60 = arith.subf %59, %33 : vector<2x8xf32>
    %61 = arith.subf %60, %58 : vector<2x8xf32>
    %cst_36 = arith.constant 2.000000e+00 : f32
    %62 = vector.broadcast %cst_36 : f32 to vector<2x8xf32>
    %63 = arith.mulf %62, %61 : vector<2x8xf32>
    %64 = arith.subf %46, %63 : vector<2x8xf32>
    %cst_37 = arith.constant dense<0.000000e+00> : vector<2xf32>
    %65 = vector.multi_reduction <add>, %64, %cst_37 [1] : vector<2x8xf32> to vector<2xf32>
    %66 = vector.shape_cast %65 : vector<2xf32> to vector<2x1xf32>
    %c0_38 = arith.constant 0 : index
    %c8 = arith.constant 8 : index
    %67 = vector.load %arg9[%c0_38, %c8] : memref<2x128xf32, #tpu.memory_space<vmem>>, vector<2x1xf32>
    tpu.vector_store %arg9[%c0_38, %c8], %66 {strides = array<i32>} : memref<2x128xf32, #tpu.memory_space<vmem>>, vector<2x1xf32>,
    return
  }
  func.func @transform_0(%arg0: i32) -> (i32, i32) {
    %c0_i32 = arith.constant 0 : i32
    %c0_i32_0 = arith.constant 0 : i32
    return %arg0, %c0_i32 : i32, i32
  }
  func.func @transform_1(%arg0: i32) -> (i32, i32) {
    %c0_i32 = arith.constant 0 : i32
    %c0_i32_0 = arith.constant 0 : i32
    %c0_i32_1 = arith.constant 0 : i32
    return %c0_i32, %c0_i32_0 : i32, i32
  }
  func.func @transform_2(%arg0: i32) -> (i32, i32) {
    %c0_i32 = arith.constant 0 : i32
    %c0_i32_0 = arith.constant 0 : i32
    %c0_i32_1 = arith.constant 0 : i32
    return %c0_i32, %c0_i32_0 : i32, i32
  }
  func.func @transform_3(%arg0: i32) -> (i32, i32) {
    %c0_i32 = arith.constant 0 : i32
    %c0_i32_0 = arith.constant 0 : i32
    %c0_i32_1 = arith.constant 0 : i32
    return %c0_i32, %c0_i32_0 : i32, i32
  }
  func.func @transform_4(%arg0: i32) -> (i32, i32) {
    %c0_i32 = arith.constant 0 : i32
    %c0_i32_0 = arith.constant 0 : i32
    %c0_i32_1 = arith.constant 0 : i32
    return %c0_i32, %c0_i32_0 : i32, i32
  }
  func.func @transform_5(%arg0: i32) -> (i32, i32) {
    %c0_i32 = arith.constant 0 : i32
    %c0_i32_0 = arith.constant 0 : i32
    %c0_i32_1 = arith.constant 0 : i32
    return %c0_i32, %c0_i32_0 : i32, i32
  }
  func.func @transform_6(%arg0: i32) -> (i32, i32) {
    %c0_i32 = arith.constant 0 : i32
    %c0_i32_0 = arith.constant 0 : i32
    %c0_i32_1 = arith.constant 0 : i32
    return %c0_i32, %c0_i32_0 : i32, i32
  }
  func.func @transform_7(%arg0: i32) -> (i32, i32) {
    %c0_i32 = arith.constant 0 : i32
    %c0_i32_0 = arith.constant 0 : i32
    return %arg0, %c0_i32 : i32, i32
  }
  func.func @transform_8(%arg0: i32) -> (i32, i32) {
    %c0_i32 = arith.constant 0 : i32
    %c0_i32_0 = arith.constant 0 : i32
    return %arg0, %c0_i32 : i32, i32
  }
}

</mosaic_0001>

<bundles_post_ra>
// kernel: tpu_custom_call.1
= control target key start
LH: loop header
LB: loop body
LE: loop exit
PB: predicated region body
PF: predicated region fallthrough
CT: control target
= control target key end

     0   :  { %13 = vsyncpa [#allocation3], 0  ;;  %s699_s0 = inlined_call_operand.hbm [shape: f32[2,16], index: 0, kind: input, shape index: {}]   ;;  %s700_s1 = inlined_call_operand.hbm [shape: bf16[16,32], index: 1, kind: input, shape index: {}]   ;;  %s701_s2 = inlined_call_operand.hbm [shape: f32[1,32], index: 2, kind: input, shape index: {}]   ;;  %s702_s3 = inlined_call_operand.hbm [shape: bf16[32,32], index: 3, kind: input, shape index: {}]   ;;  %s703_s4 = inlined_call_operand.hbm [shape: f32[1,32], index: 4, kind: input, shape index: {}]   ;;  %s704_s5 = inlined_call_operand.vmem [shape: bf16[32,128], index: 5, kind: input, shape index: {}]   ;;  %s705_s6 = inlined_call_operand.vmem [shape: f32[1,128], index: 6, kind: input, shape index: {}]   ;;  %s706_s7 = inlined_call_operand.vmem [shape: f32[2,8], index: 7, kind: input, shape index: {}]   ;;  %s707_s8 = inlined_call_operand.hbm [shape: f32[2,128], index: 8, kind: output, shape index: {}]  }
   0x1   :  { %14 = vsyncpa [#allocation6], 0 }
   0x2   :  { %15 = vsyncpa [#allocation9], 0 }
   0x3   :  { %16 = vsyncpa [#allocation4], 0  ;;  %s550_s27 = smov [#allocation5]   ;;  %s410_s9 = scalar_lea.hbm %s700_s1, 128 }
   0x4   :  { %s32_s28 = sshll.u32 %s550_s27, 4  ;;  %p411_p0 = scmp.ne.s32.totalorder %s700_s1, %s410_s9  ;;  %s33_s28 = int_to_ptr.vmem [resolvable:$true] %s32_s28 }
   0x5   :  { %p414_p1 = scmp.lt.u32.totalorder %s410_s9, %s700_s1 }
   0x7   :  { %p416_p2 = pnand %p414_p1, %p411_p0 }
   0x9   :  { %419 = shalt.err (!%p416_p2)
}
   0xa   :  { %s420_s14 = scalar_lea.vmem %s33_s28, 128  ;;  %p425_p4 = scmp.lt.s32.totalorder %s33_s28, %s33_s28 }
   0xb   :  { %p421_p3 = scmp.ne.s32.totalorder %s33_s28, %s420_s14  ;;  %p426_p5 = scmp.lt.s32.totalorder %s420_s14, %s420_s14 }
   0xd   :  { %p427_p6 = por %p426_p5, %p425_p4 }
   0xf   :  { %p428_p7 = pnand %p427_p6, %p421_p3 }
  0x11   :  { %431 = shalt.err (!%p428_p7)
}
  0x12   :  { %s551_s15 = smov 64   ;;  %s552_s16 = smov 4  }
  0x13   :  { %38 = dma.hbm_to_vmem [thread:$0]  %s700_s1, 128, %s33_s28, [#allocation6], %s551_s15, %s551_s15, %s552_s16  }
  0x14   :  { %s553_s19 = smov [#allocation8]   ;;  %s554_s21 = smov [#allocation2]  }
  0x15   :  { %s54_s20 = sshll.u32 %s553_s19, 4  ;;  %s23_s22 = sshll.u32 %s554_s21, 4  ;;  %s55_s20 = int_to_ptr.vmem [resolvable:$true] %s54_s20  ;;  %s24_s22 = int_to_ptr.vmem [resolvable:$true] %s23_s22 }
  0x16   :  { %s432_s25 = scalar_lea.hbm %s702_s3, 256 }
  0x17   :  { %p433_p8 = scmp.ne.s32.totalorder %s702_s3, %s432_s25  ;;  %p436_p9 = scmp.lt.u32.totalorder %s432_s25, %s702_s3 }
  0x19   :  { %p438_p10 = pnand %p436_p9, %p433_p8 }
  0x1b   :  { %441 = shalt.err (!%p438_p10)
}
  0x1c   :  { %s442_s1 = scalar_lea.vmem %s55_s20, 256  ;;  %p447_p12 = scmp.lt.s32.totalorder %s55_s20, %s55_s20 }
  0x1d   :  { %p443_p11 = scmp.ne.s32.totalorder %s55_s20, %s442_s1  ;;  %p448_p13 = scmp.lt.s32.totalorder %s442_s1, %s442_s1 }
  0x1f   :  { %p449_p0 = por %p448_p13, %p447_p12 }
  0x21   :  { %p450_p1 = pnand %p449_p0, %p443_p11 }
  0x23   :  { %453 = shalt.err (!%p450_p1)
}
  0x24   :  { %60 = dma.hbm_to_vmem [thread:$0]  %s702_s3, 256, %s55_s20, [#allocation9], %s551_s15, %s551_s15, %s552_s16  }
  0x25   :  { %s454_s12 = scalar_lea.hbm %s699_s0, 32 }
  0x26   :  { %p455_p2 = scmp.ne.s32.totalorder %s699_s0, %s454_s12  ;;  %p458_p3 = scmp.lt.u32.totalorder %s454_s12, %s699_s0 }
  0x28   :  { %p460_p4 = pnand %p458_p3, %p455_p2 }
  0x2a   :  { %463 = shalt.err (!%p460_p4)
}
  0x2b   :  { %s464_s19 = scalar_lea.vmem %s24_s22, 32  ;;  %p469_p6 = scmp.lt.s32.totalorder %s24_s22, %s24_s22 }
  0x2c   :  { %p465_p5 = scmp.ne.s32.totalorder %s24_s22, %s464_s19  ;;  %p470_p7 = scmp.lt.s32.totalorder %s464_s19, %s464_s19 }
  0x2e   :  { %p471_p8 = por %p470_p7, %p469_p6 }
  0x30   :  { %p472_p9 = pnand %p471_p8, %p465_p5 }
  0x32   :  { %475 = shalt.err (!%p472_p9)
}
  0x33   :  { %26 = dma.hbm_to_vmem [thread:$0]  %s699_s0, 32, %s24_s22, [#allocation3]  }
  0x34   :  { %s555_s20 = smov [#allocation7]   ;;  %s556_s23 = smov [#allocation10]  }
  0x35   :  { %s45_s21 = sshll.u32 %s555_s20, 4  ;;  %s67_s24 = sshll.u32 %s556_s23, 4  ;;  %s46_s21 = int_to_ptr.vmem [resolvable:$true] %s45_s21  ;;  %s68_s24 = int_to_ptr.vmem [resolvable:$true] %s67_s24 }
  0x36   :  { %s476_s27 = scalar_lea.hbm %s701_s2, 16 }
  0x37   :  { %p477_p10 = scmp.ne.s32.totalorder %s701_s2, %s476_s27  ;;  %p480_p11 = scmp.lt.u32.totalorder %s476_s27, %s701_s2 }
  0x39   :  { %p482_p12 = pnand %p480_p11, %p477_p10 }
  0x3b   :  { %485 = shalt.err (!%p482_p12)
}
  0x3c   :  { %s486_s0 = scalar_lea.vmem %s46_s21, 16  ;;  %s490_s22 = scalar_lea.vmem %s46_s21, 32 }
  0x3d   :  { %p487_p13 = scmp.ne.s32.totalorder %s46_s21, %s486_s0  ;;  %p491_p0 = scmp.lt.s32.totalorder %s46_s21, %s46_s21 }
  0x3e   :  { %p492_p1 = scmp.lt.s32.totalorder %s490_s22, %s486_s0 }
  0x40   :  { %p493_p2 = por %p492_p1, %p491_p0 }
  0x42   :  { %p494_p3 = pnand %p493_p2, %p487_p13 }
  0x44   :  { %497 = shalt.err (!%p494_p3)
}
  0x45   :  { %48 = dma.hbm_to_vmem [thread:$0]  %s701_s2, 16, %s46_s21, [#allocation6]  }
  0x46   :  { %s498_s13 = scalar_lea.hbm %s703_s4, 16 }
  0x47   :  { %p499_p4 = scmp.ne.s32.totalorder %s703_s4, %s498_s13  ;;  %p502_p5 = scmp.lt.u32.totalorder %s498_s13, %s703_s4 }
  0x49   :  { %p504_p6 = pnand %p502_p5, %p499_p4 }
  0x4b   :  { %507 = shalt.err (!%p504_p6)
}
  0x4c   :  { %s508_s3 = scalar_lea.vmem %s68_s24, 16  ;;  %s512_s16 = scalar_lea.vmem %s68_s24, 32 }
  0x4d   :  { %p509_p7 = scmp.ne.s32.totalorder %s68_s24, %s508_s3  ;;  %p513_p8 = scmp.lt.s32.totalorder %s68_s24, %s68_s24 }
  0x4e   :  { %p514_p9 = scmp.lt.s32.totalorder %s512_s16, %s508_s3 }
  0x50   :  { %p515_p10 = por %p514_p9, %p513_p8 }
  0x52   :  { %p516_p11 = pnand %p515_p10, %p509_p7 }
  0x54   :  { %519 = shalt.err (!%p516_p11)
}
  0x55   :  { %70 = dma.hbm_to_vmem [thread:$0]  %s703_s4, 16, %s68_s24, [#allocation9]  }
  0x56   :  { %542 = dma.done.wait [#allocation3], 32  }
  0x57   :  { %543 = vsyncadd [#allocation3], 4294967264 }
  0x58   :  { %544 = dma.done.wait [#allocation6], 144  }
  0x59   :  { %545 = vsyncadd [#allocation6], 4294967152 }
  0x5a   :  { %546 = dma.done.wait [#allocation9], 272  }
  0x5b   :  { %547 = vsyncadd [#allocation9], 4294967024  ;;  %v557_v0 = vmov 0.0   ;;  %vm558_vm0 = vmmov 0   ;;  %v397_v1 = vld [vmem:[#allocation5] sm:$0xff]   ;;  %vm110_vm1 = vcmask 130048  }
  0x5c   :  { %365 = vmatprep.subr.bf16.mxu0 %v557_v0  ;;  %301 = vst [vmem:[#allocation11] sm:$0x3] %v557_v0  ;;  %367 = vmatprep.mubr.msk.bf16.mxu0 %vm558_vm0, %v557_v0  ;;  %v93_v2 = vld [vmem:[#allocation2] sm:$0x3]  ;;  %v398_v4 = vld [vmem:[#allocation8] sm:$0xff]   ;;  %v399_v5 = vld [vmem:[#allocation8 + $0x8] sm:$0xff]  }
  0x5d   :  { %371 = vmatprep.subr.bf16.mxu1 %v557_v0  ;;  %375 = vmatprep.mubr.msk.bf16.mxu1 %vm558_vm0, %v557_v0  ;;  %v94_v3 = vpack.c.bf16 %v93_v2, %v93_v2  ;;  %v400_v6 = vld [vmem:[%s704_s5] sm:$0xff]   ;;  %v345_v7 = vld [vmem:[#allocation7] ss:$0 sm:$0xff]  ;;  %vm179_vm2 = vcmask 261120   ;;  %v401_v15 = vld [vmem:[%s704_s5 + $0x8] sm:$0xff]   ;;  %vm302_vm3 = vcmask 58368  }
  0x5e   :  { %366 = vmatpush3.bf16.msra.mxu0 %v397_v1  ;;  %372 = vmatpush3.bf16.msra.mxu1 %v398_v4  ;;  %v348_v16 = vld [vmem:[#allocation10] ss:$0 sm:$0xff]  ;;  %v352_v24 = vld [vmem:[%s705_s6] ss:$0 sm:$0xff]  ;;  %s559_s29 = smov [#allocation11]   ;;  %vm326_vm4 = vcmask 66624  }
  0x5f   :  { %379 = vmatprep.subr.bf16.mxu0 %v557_v0  ;;  %373 = vmatprep.subr.bf16.mxu1 %v557_v0  ;;  %v297_v34 = vld [vmem:[%s706_s7] sm:$0x3]  ;;  %s334_s30 = sshll.u32 %s559_s29, 4  ;;  %s335_s30 = int_to_ptr.vmem [resolvable:$true] %s334_s30 }
  0x60   :  { %v304_v45 = vld [vmem:[%s706_s7] sm:$0x3]  ;;  %s520_s7 = scalar_lea.vmem %s335_s30, 32  ;;  %p525_p13 = scmp.lt.s32.totalorder %s335_s30, %s335_s30 }
  0x61   :  { %368 = vmatmul.mubr.msk.bf16.vlgmr.msra.gmra.mrb[0].mxu0 %vm110_vm1, %v94_v3  ;;  %v305_v46 = vmul.f32 -0.5, %v304_v45  ;;  %p521_p12 = scmp.ne.s32.totalorder %s335_s30, %s520_s7  ;;  %p526_p0 = scmp.lt.s32.totalorder %s520_s7, %s520_s7 }
  0x62   :  { %383 = vmatprep.mubr.msk.bf16.mxu0 %vm558_vm0, %v557_v0  ;;  %374 = vmatpush3.bf16.msra.mxu1 %v399_v5 }
  0x63   :  { %380 = vmatpush3.bf16.msra.mxu0 %v400_v6  ;;  %v306_v47 = vmul.f32 %v305_v46, %v304_v45  ;;  %p527_p1 = por %p526_p0, %p525_p13 }
  0x64   :  { %381 = vmatprep.subr.bf16.mxu0 %v557_v0 }
  0x65   :  { %p528_p2 = pnand %p527_p1, %p521_p12 }
  0x67   :  { %382 = vmatpush3.bf16.msra.mxu0 %v401_v15 }
 0x134   :  { %v148_v8 = vpop.f32.mrb[0].mxu0 }
 0x135   :  { %v149_v9 = vadd.f32 %v345_v7, %v148_v8  ;;  %v369_v10 = vpop.f32.mrb[1].mxu0 }
 0x136   :  { %v151_v11 = vpop.f32.mrb[2].mxu0 }
 0x137   :  { %v154_v12 = vmax.f32 %v149_v9, 0.0  ;;  %v370_v13 = vpop.f32.mrb[3].mxu0 }
 0x139   :  { %v155_v14 = vpack.c.bf16 %v154_v12, %v154_v12 }
 0x13b   :  { %376 = vmatmul.mubr.msk.bf16.vlgmr.msra.gmra.mrb[0].mxu1 %vm179_vm2, %v155_v14 }
 0x20e   :  { %v217_v17 = vpop.f32.mrb[0].mxu1 }
 0x20f   :  { %v218_v18 = vadd.f32 %v348_v16, %v217_v17  ;;  %v377_v19 = vpop.f32.mrb[1].mxu1 }
 0x210   :  { %v220_v20 = vpop.f32.mrb[2].mxu1 }
 0x211   :  { %v223_v21 = vmax.f32 %v218_v18, 0.0  ;;  %v378_v22 = vpop.f32.mrb[3].mxu1 }
 0x213   :  { %v224_v23 = vpack.c.bf16 %v223_v21, %v223_v21 }
 0x215   :  { %384 = vmatmul.mubr.msk.bf16.vlgmr.msra.gmra.mrb[4].mxu0 %vm179_vm2, %v224_v23 }
 0x2e8   :  { %v285_v25 = vpop.f32.mrb[4].mxu0 }
 0x2e9   :  { %v286_v26 = vadd.f32 %v352_v24, %v285_v25  ;;  %v385_v27 = vpop.f32.mrb[5].mxu0 }
 0x2ea   :  { %v288_v28 = vpop.f32.mrb[6].mxu0 }
 0x2eb   :  { %291 = vrot.lane.b32.xlu0 %v286_v26, %s551_s15  ;;  %v386_v29 = vpop.f32.mrb[7].mxu0 }
 0x35d   :  { %v292_v30 = vpop.permute.xlu0 %291 }
 0x35e   :  { %v293_v31 = vmax.f32 %v292_v30, -20.0 }
 0x360   :  { %v294_v32 = vmin.f32 %v293_v31, 2.0 }
 0x362   :  { %v295_v33 = vmul.f32 1.442695, %v294_v32  ;;  %v307_v51 = vsub.f32 %v306_v47, %v294_v32 }
 0x364   :  { %402 = vpow2.f32 %v295_v33  ;;  %v356_v55 = vadd.f32 -0.9189385, %v307_v51 }
 0x36e   :  { %v403_v35 = vpop.eup %402 }
 0x36f   :  { %v298_v36 = vmul.f32 %v403_v35, %v297_v34 }
 0x371   :  { %v299_v37 = vadd.f32 %v298_v36, %v286_v26 }
 0x373   :  { %v309_v38 = vmul.f32 -2.0, %v299_v37  ;;  %404 = vtanh.f32 %v299_v37  ;;  %v319_v53 = vsub.f32 0.6931472, %v299_v37 }
 0x375   :  { %v311_v39 = vand.u32 2147483647, %v309_v38  ;;  %v310_v49 = vmax.f32 %v309_v38, 0.0 }
 0x377   :  { %v312_v40 = vsub.f32 0.0, %v311_v39 }
 0x379   :  { %v313_v41 = vmul.f32 1.442695, %v312_v40 }
 0x37b   :  { %406 = vpow2.f32 %v313_v41 }
 0x37d   :  { %v405_v42 = vpop.eup %404 }
 0x37e   :  { %303 = vst.msk [vmem:[#allocation11] sm:$0x3] %vm302_vm3, %v405_v42 }
 0x385   :  { %v407_v43 = vpop.eup %406 }
 0x386   :  { %v315_v44 = vadd.f32 1.0, %v407_v43 }
 0x388   :  { %408 = vlog2.f32 %v315_v44 }
 0x392   :  { %v409_v48 = vpop.eup %408 }
 0x393   :  { %v317_v50 = vmul.f32 0.6931472, %v409_v48 }
 0x395   :  { %v318_v52 = vadd.f32 %v317_v50, %v310_v49 }
 0x397   :  { %v320_v54 = vsub.f32 %v319_v53, %v318_v52 }
 0x399   :  { %v321_v56 = vmul.f32 2.0, %v320_v54 }
 0x39b   :  { %v322_v57 = vsub.f32 %v356_v55, %v321_v56 }
 0x39d   :  { %v323_v58 = vsel %vm302_vm3, %v322_v57, 0.0 }
 0x39e   :  { %324 = vadd.xlane.f32.xlu0 %v323_v58 }
 0x42b   :  { %v325_v59 = vpop.xlane.xlu0 %324 }
 0x42c   :  { %327 = vst.msk [vmem:[#allocation11] sm:$0x3] %vm326_vm4, %v325_v59 }
 0x42d   :  { %531 = shalt.err (!%p528_p2)
}
 0x42e   :  { %s532_s0 = scalar_lea.hbm %s707_s8, 32 }
 0x42f   :  { %p533_p3 = scmp.ne.s32.totalorder %s707_s8, %s532_s0  ;;  %p536_p4 = scmp.lt.u32.totalorder %s532_s0, %s707_s8 }
 0x431   :  { %p538_p5 = pnand %p536_p4, %p533_p3 }
 0x433   :  { %541 = shalt.err (!%p538_p5)
}
 0x434   :  { %337 = dma.vmem_to_hbm [thread:$0]  %s335_s30, 32, %s707_s8, [#allocation4]  }
 0x435   :  { %548 = dma.done.wait [#allocation4], 32  }
 0x436   :  { %549 = vsyncadd [#allocation4], 4294967264 }
 0x437   :  { %341 = vsyncpa [#allocation3], 1 }
 0x438   :  { %342 = vsyncpa [#allocation6], 1 }
 0x439   :  { %343 = vsyncpa [#allocation9], 1 }
 0x43a   :  { %344 = vsyncpa [#allocation4], 1 }

</bundles_post_ra>
